<compile_context>
chip_gen: v6e
topology: v6e:2x2x1
jax: 0.10.0
libtpu: 0.0.40
codegen_flags: <defaults>
</compile_context>

<pallas_src>
import functools

import jax
import jax.numpy as jnp
from jax import lax
from jax.experimental import pallas as pl
from jax.experimental.pallas import tpu as pltpu


def _round_up(x, m):
    return (x + m - 1) // m * m


def _choose_tm(M, tm_max=512):
    """Large M tiles (per-grid-step overhead ~0.35us), but keep >=2 grid steps
    when possible so both TensorCores get work on v7x."""
    if M <= 256:
        return M                                     # single full-extent block
    return min(tm_max, _round_up(-(-M // 2), 128))


# ----------------------------------------------------------------------------
# Pallas kernel: fused bf16 GEMM + bias [+ ReLU], f32 MXU accumulation
# ----------------------------------------------------------------------------
def _matmul_bias_kernel(x_ref, w_ref, b_ref, o_ref, *, relu):
    acc = jnp.dot(x_ref[...], w_ref[...], preferred_element_type=jnp.float32)
    acc = acc + b_ref[...]
    if relu:
        acc = jnp.maximum(acc, 0.0)
    o_ref[...] = acc.astype(o_ref.dtype)


def fused_matmul_bias(x, w, bias, *, relu, out_dtype=jnp.float32, tm_max=512):
    """(M, K) @ (K, N) + bias[N] (+ ReLU).

    Operands are cast to bf16 (MXU native); accumulation is f32.  No host-side
    padded copies and no output slice: K and N are full-extent blocks, M is
    tiled with grid = cdiv(M, tm); a trailing partial tile only produces rows
    that Pallas masks on store.
    """
    M, K = x.shape
    K2, N = w.shape
    assert K == K2, (x.shape, w.shape)
    tm = _choose_tm(M, tm_max)

    xb = x.astype(jnp.bfloat16)
    wb = w.astype(jnp.bfloat16)       # BN scale already folded in by the caller
    b2 = bias.astype(jnp.float32).reshape(1, N)

    kernel = functools.partial(_matmul_bias_kernel, relu=relu)
    return pl.pallas_call(
        kernel,
        out_shape=jax.ShapeDtypeStruct((M, N), out_dtype),
        grid_spec=pltpu.PrefetchScalarGridSpec(
            num_scalar_prefetch=0,
            grid=(pl.cdiv(M, tm),),
            in_specs=[
                pl.BlockSpec((tm, K), lambda i: (i, 0)),   # activations, M-tiled
                pl.BlockSpec((K, N), lambda i: (0, 0)),    # weights, VMEM-resident
                pl.BlockSpec((1, N), lambda i: (0, 0)),    # fused bias (BN shift)
            ],
            out_specs=pl.BlockSpec((tm, N), lambda i: (i, 0)),
        ),
        compiler_params=pltpu.CompilerParams(
            dimension_semantics=("parallel",),
        ),
    )(xb, wb, b2)


# ----------------------------------------------------------------------------
# JAX glue: 3x3 patch extraction, conv / transposed-conv as one GEMM each
# ----------------------------------------------------------------------------
def _patches3x3(x_nhwc):
    """3x3 valid-conv patches of a pad-1 NHWC input, built in bf16.
    Returns ((N*H*W, 9*C) with row order (ty, tx, ci), (N, H, W))."""
    x = x_nhwc.astype(jnp.bfloat16)
    n, h, w, c = x.shape
    xp = jnp.pad(x, ((0, 0), (1, 1), (1, 1), (0, 0)))
    cols = [xp[:, ty:ty + h, tx:tx + w, :] for ty in range(3) for tx in range(3)]
    p = jnp.concatenate(cols, axis=-1)                 # (N, H, W, 9*C)
    return p.reshape(n * h * w, 9 * c), (n, h, w)


def conv3x3_p1(x, wc, scale, shift, *, relu, out_dtype):
    """Conv2d(k=3, p=1, bias folded into shift). x: NHWC; wc: (Cout, Cin, 3, 3)."""
    cout, cin = wc.shape[0], wc.shape[1]
    wm = jnp.transpose(wc, (2, 3, 1, 0)).reshape(9 * cin, cout)
    wm = wm * scale[None, :]                           # fold BN scale into weights
    patches, (n, h, w) = _patches3x3(x)
    y = fused_matmul_bias(patches, wm, shift, relu=relu, out_dtype=out_dtype)
    return y.reshape(n, h, w, cout)


def _subpixel_weight(wt):
    """ConvTranspose2d(k=4,s=2,p=1) weight (Cin, Cout, 4, 4) -> (9*Cin, 4*Cout)
    matrix for ONE 3x3 conv on the pad-1 input that emits all 4 output phases.
    Row order (ty, tx, ci); column order (py, px, co); unused taps are zero.
    Derivation: oy = 2*iy - 1 + ky with oy = 2*m + py, iy = m + ty - 1
                => ky = py - 2*ty + 3 (valid iff 0 <= ky < 4), same for x."""
    cin, cout = wt.shape[0], wt.shape[1]
    wm = jnp.zeros((3, 3, cin, 2, 2, cout), wt.dtype)
    for ty in range(3):
        for tx in range(3):
            for py in range(2):
                for px in range(2):
                    ky, kx = py - 2 * ty + 3, px - 2 * tx + 3
                    if 0 <= ky < 4 and 0 <= kx < 4:
                        wm = wm.at[ty, tx, :, py, px, :].set(wt[:, :, ky, kx])
    return wm.reshape(9 * cin, 4 * cout)


def conv_transpose_4x4_s2_p1(x, wt, scale, shift, *, relu, out_dtype):
    """ConvTranspose2d(k=4, s=2, p=1) via subpixel decomposition (no zero insertion).
    x: NHWC; wt: (Cin, Cout, 4, 4) (PyTorch layout)."""
    cout = wt.shape[1]
    wm = _subpixel_weight(wt) * jnp.tile(scale, 4)[None, :]   # fold BN scale
    bias = jnp.tile(shift, 4)
    patches, (n, h, w) = _patches3x3(x)
    y = fused_matmul_bias(patches, wm, bias, relu=relu, out_dtype=out_dtype)
    y = y.reshape(n, h, w, 2, 2, cout)                 # (n, my, mx, py, px, co)
    y = jnp.transpose(y, (0, 1, 3, 2, 4, 5))           # (n, my, py, mx, px, co)
    return y.reshape(n, 2 * h, 2 * w, cout)


# ----------------------------------------------------------------------------
# XLA references used only for self-checking the Pallas path
# ----------------------------------------------------------------------------
def _convt_ref(x_nhwc, wt):
    w_hwio = jnp.transpose(wt[:, :, ::-1, ::-1], (2, 3, 0, 1))   # flip + HWIO
    return lax.conv_general_dilated(
        x_nhwc, w_hwio, window_strides=(1, 1), padding=((2, 2), (2, 2)),
        lhs_dilation=(2, 2), dimension_numbers=("NHWC", "HWIO", "NHWC"),
        precision=lax.Precision.HIGHEST)


def _conv3x3_ref(x_nhwc, wc):
    w_hwio = jnp.transpose(wc, (2, 3, 1, 0))
    return lax.conv_general_dilated(
        x_nhwc, w_hwio, window_strides=(1, 1), padding=((1, 1), (1, 1)),
        dimension_numbers=("NHWC", "HWIO", "NHWC"),
        precision=lax.Precision.HIGHEST)


# ----------------------------------------------------------------------------
# Parameters (deterministic synthetic init) and forward pass
# ----------------------------------------------------------------------------
def _bn_fold(gamma, beta, mean, var, conv_bias=None, eps=1e-5):
    s = gamma / jnp.sqrt(var + eps)
    shift = beta - mean * s
    if conv_bias is not None:
        shift = shift + s * conv_bias
    return s, shift


def init_params(key, in_dim, h1, h2, class_dim):
    ks = jax.random.split(key, 6)

    def w(k, shape, fan_in):
        return jax.random.normal(k, shape, jnp.float32) / jnp.sqrt(float(fan_in))

    p = {
        # UpSampler: ConvTranspose2d(in->h1)+BN+ReLU, ConvTranspose2d(h1->h2)+BN+ReLU
        "up1_w": w(ks[0], (in_dim, h1, 4, 4), in_dim * 16),
        "up1_b": w(ks[1], (h1,), in_dim * 16),
        "up2_w": w(ks[2], (h1, h2, 4, 4), h1 * 16),
        "up2_b": w(ks[3], (h2,), h1 * 16),
        # DoubleConv[:4]: Conv3x3(h2->class, bias=False)+BN+ReLU+Conv3x3(class->class)
        "sc1_w": w(ks[4], (class_dim, h2, 3, 3), h2 * 9),
        "sc2_w": w(ks[5], (class_dim, class_dim, 3, 3), class_dim * 9),
    }
    for name, c in (("bn_up1", h1), ("bn_up2", h2), ("bn_sc1", class_dim)):
        p[name] = dict(gamma=jnp.ones(c), beta=jnp.zeros(c),
                       mean=jnp.zeros(c), var=jnp.ones(c))
    return p


def segm_head_forward(params, img_feat_nchw):
    x = jnp.transpose(img_feat_nchw, (0, 2, 3, 1))         # NCHW -> NHWC
    # UpSampler
    s, b = _bn_fold(**params["bn_up1"], conv_bias=params["up1_b"])
    x = conv_transpose_4x4_s2_p1(x, params["up1_w"], s, b, relu=True,
                                 out_dtype=jnp.bfloat16)
    s, b = _bn_fold(**params["bn_up2"], conv_bias=params["up2_b"])
    x = conv_transpose_4x4_s2_p1(x, params["up2_w"], s, b, relu=True,
                                 out_dtype=jnp.bfloat16)
    # segm_net = DoubleConv[:4]
    s, b = _bn_fold(**params["bn_sc1"])
    x = conv3x3_p1(x, params["sc1_w"], s, b, relu=True, out_dtype=jnp.bfloat16)
    cd = params["sc2_w"].shape[0]
    x = conv3x3_p1(x, params["sc2_w"], jnp.ones(cd), jnp.zeros(cd),
                   relu=False, out_dtype=jnp.float32)
    segm_logits = jnp.transpose(x, (0, 3, 1, 2))            # NHWC -> NCHW
    return {"segm_logits": segm_logits}


if __name__ == "__main__":
    key = jax.random.PRNGKey(0)
    k_in, k_par, k_a, k_b, k_c, k_d = jax.random.split(key, 6)

    # small shapes: batch=2, in_dim=8, H=W=8 -> logits (2, class_dim, 32, 32)
    batch, in_dim, h1, h2, class_dim, hw = 2, 8, 16, 8, 4, 8
    img_feat = jax.random.normal(k_in, (batch, in_dim, hw, hw), jnp.float32)  # NCHW
    params = init_params(k_par, in_dim, h1, h2, class_dim)

    # 1) Pallas GEMM vs bf16-rounded f32 reference
    xt = jax.random.normal(k_a, (256, 72), jnp.float32)
    wt = jax.random.normal(k_b, (72, 8), jnp.float32)
    bt = jnp.arange(8, dtype=jnp.float32)
    got = fused_matmul_bias(xt, wt, bt, relu=True)
    xr = xt.astype(jnp.bfloat16).astype(jnp.float32)
    wr = wt.astype(jnp.bfloat16).astype(jnp.float32)
    want = jnp.maximum(
        jnp.dot(xr, wr, precision=lax.Precision.HIGHEST) + bt[None, :], 0.0)
    assert jnp.allclose(got, want, atol=1e-2, rtol=1e-2), "Pallas GEMM mismatch"

    # 2) subpixel ConvTranspose2d(k=4,s=2,p=1) vs XLA zero-insertion reference
    xc = jax.random.normal(k_c, (batch, hw, hw, in_dim), jnp.float32)
    got_t = conv_transpose_4x4_s2_p1(xc, params["up1_w"],
                                     jnp.ones(h1), jnp.zeros(h1),
                                     relu=False, out_dtype=jnp.float32)
    want_t = _convt_ref(xc.astype(jnp.bfloat16).astype(jnp.float32),
                        params["up1_w"].astype(jnp.bfloat16).astype(jnp.float32))
    assert jnp.allclose(got_t, want_t, atol=1e-2, rtol=1e-2), "conv-transpose mismatch"

    # 3) Conv3x3(p=1) vs XLA reference
    xd = jax.random.normal(k_d, (batch, hw, hw, h2), jnp.float32)
    got_c = conv3x3_p1(xd, params["sc1_w"], jnp.ones(class_dim),
                       jnp.zeros(class_dim), relu=False, out_dtype=jnp.float32)
    want_c = _conv3x3_ref(xd.astype(jnp.bfloat16).astype(jnp.float32),
                          params["sc1_w"].astype(jnp.bfloat16).astype(jnp.float32))
    assert jnp.allclose(got_c, want_c, atol=1e-2, rtol=1e-2), "conv3x3 mismatch"

    # full forward
    fwd = jax.jit(segm_head_forward)
    out = fwd(params, img_feat)
    logits = jax.block_until_ready(out["segm_logits"])

    assert logits.shape == (batch, class_dim, 4 * hw, 4 * hw), logits.shape
    assert bool(jnp.all(jnp.isfinite(logits)))
    print("KERNEL_OK")
</pallas_src>

<mosaic_0001>
module attributes {stable_mosaic.version = 11 : i64} {
  func.func @_matmul_bias_kernel(%arg0: i32, %arg1: memref<256x72xbf16, #tpu.memory_space<vmem>>, %arg2: memref<72x8xbf16, #tpu.memory_space<vmem>>, %arg3: memref<1x8xf32, #tpu.memory_space<vmem>>, %arg4: memref<256x8xf32, #tpu.memory_space<vmem>>) attributes {dimension_semantics = [#tpu.dimension_semantics<parallel>], iteration_bounds = array<i64: 1>, scalar_prefetch = 0 : i64, scratch_operands = 0 : i64, tpu.core_type = #tpu.core_type<tc>, window_params = [{transform_indices = @transform_0, window_bounds = array<i64: 256, 72>}, {pipeline_mode = #tpu.pipeline_mode<synchronous>, transform_indices = @transform_1, window_bounds = array<i64: 72, 8>}, {pipeline_mode = #tpu.pipeline_mode<synchronous>, transform_indices = @transform_2, window_bounds = array<i64: 1, 8>}, {transform_indices = @transform_3, window_bounds = array<i64: 256, 8>}]} {
    %c0 = arith.constant 0 : index
    %c0_0 = arith.constant 0 : index
    %0 = vector.load %arg1[%c0, %c0_0] : memref<256x72xbf16, #tpu.memory_space<vmem>>, vector<256x72xbf16>
    %c0_1 = arith.constant 0 : index
    %c0_2 = arith.constant 0 : index
    %1 = vector.load %arg2[%c0_1, %c0_2] : memref<72x8xbf16, #tpu.memory_space<vmem>>, vector<72x8xbf16>
    %cst = arith.constant dense<0.000000e+00> : vector<256x8xf32>
    %2 = tpu.matmul %0, %1, %cst {dimension_numbers = #tpu.dot_dimension_numbers<[1], [0], [0], [1], [0, 0, 1, 1], [], []>} : vector<256x72xbf16>, vector<72x8xbf16>, vector<256x8xf32> -> vector<256x8xf32>
    %c0_3 = arith.constant 0 : index
    %c0_4 = arith.constant 0 : index
    %3 = vector.load %arg3[%c0_3, %c0_4] : memref<1x8xf32, #tpu.memory_space<vmem>>, vector<1x8xf32>
    %4 = vector.broadcast %3 : vector<1x8xf32> to vector<256x8xf32>
    %5 = arith.addf %2, %4 : vector<256x8xf32>
    %cst_5 = arith.constant 0.000000e+00 : f32
    %6 = vector.broadcast %cst_5 : f32 to vector<256x8xf32>
    %7 = arith.maximumf %5, %6 : vector<256x8xf32>
    %c0_6 = arith.constant 0 : index
    %c0_7 = arith.constant 0 : index
    %8 = vector.load %arg4[%c0_6, %c0_7] : memref<256x8xf32, #tpu.memory_space<vmem>>, vector<256x8xf32>
    tpu.vector_store %arg4[%c0_6, %c0_7], %7 {strides = array<i32>} : memref<256x8xf32, #tpu.memory_space<vmem>>, vector<256x8xf32>,
    return
  }
  func.func @transform_0(%arg0: i32) -> (i32, i32) {
    %c0_i32 = arith.constant 0 : i32
    %c0_i32_0 = arith.constant 0 : i32
    return %arg0, %c0_i32 : i32, i32
  }
  func.func @transform_1(%arg0: i32) -> (i32, i32) {
    %c0_i32 = arith.constant 0 : i32
    %c0_i32_0 = arith.constant 0 : i32
    %c0_i32_1 = arith.constant 0 : i32
    return %c0_i32, %c0_i32_0 : i32, i32
  }
  func.func @transform_2(%arg0: i32) -> (i32, i32) {
    %c0_i32 = arith.constant 0 : i32
    %c0_i32_0 = arith.constant 0 : i32
    %c0_i32_1 = arith.constant 0 : i32
    return %c0_i32, %c0_i32_0 : i32, i32
  }
  func.func @transform_3(%arg0: i32) -> (i32, i32) {
    %c0_i32 = arith.constant 0 : i32
    %c0_i32_0 = arith.constant 0 : i32
    return %arg0, %c0_i32 : i32, i32
  }
}

</mosaic_0001>

<bundles_post_ra>
// kernel: tpu_custom_call.1
= control target key start
LH: loop header
LB: loop body
LE: loop exit
PB: predicated region body
PF: predicated region fallthrough
CT: control target
= control target key end

     0   :  { %vm219_vm0 = vcmask 1043456   ;;  %vm170_vm1 = vcmask 588800   ;;  %vm416_vm2 = vcmask 64512   ;;  %s851_s1 = inlined_call_operand.vmem [shape: bf16[72,8], index: 1, kind: input, shape index: {}]   ;;  %s852_s0 = inlined_call_operand.vmem [shape: bf16[256,72], index: 0, kind: input, shape index: {}]   ;;  %s853_s2 = inlined_call_operand.vmem [shape: f32[1,8], index: 2, kind: input, shape index: {}]   ;;  %s854_s3 = inlined_call_operand.vmem [shape: f32[256,8], index: 3, kind: output, shape index: {}]  }
   0x1   :  { %v566_v0 = vld [vmem:[%s851_s1 + $0x20] ss:$0 sps:$4 sm:$0xff]   ;;  %v567_v1 = vld [vmem:[%s851_s1 + $0x18] sm:$0xff]   ;;  %v568_v3 = vld [vmem:[%s851_s1 + $0x10] sm:$0xff]  }
   0x2   :  { %564 = vmatprep.subr.msk.bf16.mxu0 %vm219_vm0, %v566_v0  ;;  %565 = vmatprep.subr.msk.bf16.mxu1 %vm219_vm0, %v566_v0  ;;  %v221_v2 = vsel %vm219_vm0, %v566_v0, 0  ;;  %v571_v4 = vld [vmem:[%s852_s0] sm:$0xff]   ;;  %v569_v6 = vld [vmem:[%s851_s1 + $0x8] sm:$0xff]   ;;  %v575_v10 = vld [vmem:[%s852_s0 + $0x10] sm:$0xff]  }
   0x3   :  { %513 = vmatpush3.bf16.msra.mxu0 %v221_v2  ;;  %559 = vmatpush3.bf16.msra.mxu1 %v221_v2  ;;  %v572_v5 = vld [vmem:[%s852_s0 + $0x40] sm:$0xff]   ;;  %v573_v8 = vld [vmem:[%s852_s0 + $0x8] sm:$0xff]   ;;  %v576_v11 = vld [vmem:[%s852_s0 + $0x50] sm:$0xff]  }
   0x4   :  { %514 = vmatprep.subr.bf16.mxu0 %v567_v1  ;;  %555 = vmatprep.subr.bf16.mxu1 %v567_v1  ;;  %v570_v7 = vld [vmem:[%s851_s1] sm:$0xff]   ;;  %v574_v9 = vld [vmem:[%s852_s0 + $0x48] sm:$0xff]   ;;  %v577_v12 = vld [vmem:[%s852_s0 + $0x18] sm:$0xff]  }
   0x5   :  { %522 = vmatprep.mubr.msk.bf16.mxu0 %vm170_vm1, %v571_v4  ;;  %538 = vmatprep.mubr.msk.bf16.mxu1 %vm170_vm1, %v572_v5  ;;  %v578_v13 = vld [vmem:[%s852_s0 + $0x58] sm:$0xff]   ;;  %v579_v14 = vld [vmem:[%s852_s0 + $0x20] sm:$0xff]   ;;  %v581_v16 = vld [vmem:[%s852_s0 + $0x28] sm:$0xff]  }
   0x6   :  { %v580_v15 = vld [vmem:[%s852_s0 + $0x60] sm:$0xff]   ;;  %v582_v17 = vld [vmem:[%s852_s0 + $0x68] sm:$0xff]   ;;  %v583_v18 = vld [vmem:[%s852_s0 + $0x30] sm:$0xff]  }
   0x7   :  { %515 = vmatpush3.bf16.msra.mxu0 %v567_v1  ;;  %560 = vmatpush3.bf16.msra.mxu1 %v567_v1  ;;  %v584_v19 = vld [vmem:[%s852_s0 + $0x70] sm:$0xff]   ;;  %v585_v20 = vld [vmem:[%s852_s0 + $0x38] sm:$0xff]   ;;  %v689_v22 = vld [vmem:[%s853_s2] ss:$0 sm:$0xff] }
   0x8   :  { %516 = vmatprep.subr.bf16.mxu0 %v568_v3  ;;  %556 = vmatprep.subr.bf16.mxu1 %v568_v3  ;;  %v586_v21 = vld [vmem:[%s852_s0 + $0x78] sm:$0xff]  }
   0xb   :  { %517 = vmatpush3.bf16.msra.mxu0 %v568_v3  ;;  %561 = vmatpush3.bf16.msra.mxu1 %v568_v3 }
   0xc   :  { %518 = vmatprep.subr.bf16.mxu0 %v569_v6  ;;  %557 = vmatprep.subr.bf16.mxu1 %v569_v6 }
   0xf   :  { %519 = vmatpush3.bf16.msra.mxu0 %v569_v6  ;;  %562 = vmatpush3.bf16.msra.mxu1 %v569_v6 }
  0x10   :  { %520 = vmatprep.subr.bf16.mxu0 %v570_v7  ;;  %558 = vmatprep.subr.bf16.mxu1 %v570_v7 }
  0x13   :  { %521 = vmatpush3.bf16.msra.mxu0 %v570_v7  ;;  %563 = vmatpush3.bf16.msra.mxu1 %v570_v7 }
  0x16   :  { %523 = vmatmul.mubr.msk.bf16.vlgmr.msra.gmra.mxu0 %vm170_vm1, %v573_v8  ;;  %539 = vmatmul.mubr.msk.bf16.vlgmr.msra.gmra.mxu1 %vm170_vm1, %v574_v9 }
  0x17   :  { %526 = vmatprep.mubr.msk.bf16.mxu0 %vm170_vm1, %v575_v10  ;;  %542 = vmatprep.mubr.msk.bf16.mxu1 %vm170_vm1, %v576_v11 }
  0x1e   :  { %527 = vmatmul.mubr.msk.bf16.gmra.mxu0 %vm170_vm1, %v577_v12  ;;  %543 = vmatmul.mubr.msk.bf16.gmra.mxu1 %vm170_vm1, %v578_v13 }
  0x1f   :  { %530 = vmatprep.mubr.msk.bf16.mxu0 %vm170_vm1, %v579_v14  ;;  %546 = vmatprep.mubr.msk.bf16.mxu1 %vm170_vm1, %v580_v15 }
  0x26   :  { %531 = vmatmul.mubr.msk.bf16.gmra.mxu0 %vm170_vm1, %v581_v16  ;;  %547 = vmatmul.mubr.msk.bf16.gmra.mxu1 %vm170_vm1, %v582_v17 }
  0x27   :  { %534 = vmatprep.mubr.msk.bf16.mxu0 %vm170_vm1, %v583_v18  ;;  %550 = vmatprep.mubr.msk.bf16.mxu1 %vm170_vm1, %v584_v19 }
  0x2e   :  { %535 = vmatmul.mubr.msk.bf16.gmra.mxu0 %vm170_vm1, %v585_v20  ;;  %551 = vmatmul.mubr.msk.bf16.gmra.mxu1 %vm170_vm1, %v586_v21 }
  0xd6   :  { %v524_v23 = vpop.f32.mrf.mxu0  ;;  %v540_v24 = vpop.f32.mrf.mxu1 }
  0xd7   :  { %v266_v25 = vadd.f32 %v524_v23, %v689_v22  ;;  %v330_v26 = vadd.f32 %v540_v24, %v689_v22 }
  0xd8   :  { %v257_v27 = vpop.f32.mrf.mxu0  ;;  %v321_v28 = vpop.f32.mrf.mxu1 }
  0xd9   :  { %v386_v29 = vmax.f32 %v266_v25, 0.0  ;;  %v402_v30 = vmax.f32 %v330_v26, 0.0  ;;  %v258_v31 = vadd.f32 %v689_v22, %v257_v27  ;;  %v322_v32 = vadd.f32 %v689_v22, %v321_v28 }
  0xda   :  { %v525_v33 = vpop.f32.mrf.mxu0  ;;  %v541_v34 = vpop.f32.mrf.mxu1 }
  0xdb   :  { %419 = vst.msk [vmem:[%s854_s3 + $0x10] sm:$0xff] %vm416_vm2, %v386_v29  ;;  %435 = vst.msk [vmem:[%s854_s3 + $0x90] sm:$0xff] %vm416_vm2, %v402_v30  ;;  %v384_v35 = vmax.f32 %v258_v31, 0.0  ;;  %v400_v36 = vmax.f32 %v322_v32, 0.0  ;;  %v269_v37 = vadd.f32 %v525_v33, %v689_v22  ;;  %v333_v38 = vadd.f32 %v541_v34, %v689_v22 }
  0xdc   :  { %v260_v39 = vpop.f32.mrf.mxu0  ;;  %v324_v40 = vpop.f32.mrf.mxu1 }
  0xdd   :  { %417 = vst.msk [vmem:[%s854_s3] sm:$0xff] %vm416_vm2, %v384_v35  ;;  %433 = vst.msk [vmem:[%s854_s3 + $0x80] sm:$0xff] %vm416_vm2, %v400_v36  ;;  %v387_v41 = vmax.f32 %v269_v37, 0.0  ;;  %v403_v42 = vmax.f32 %v333_v38, 0.0  ;;  %v261_v43 = vadd.f32 %v689_v22, %v260_v39  ;;  %v325_v44 = vadd.f32 %v689_v22, %v324_v40 }
  0xde   :  { %v528_v45 = vpop.f32.mrf.mxu0  ;;  %v544_v46 = vpop.f32.mrf.mxu1 }
  0xdf   :  { %420 = vst.msk [vmem:[%s854_s3 + $0x18] sm:$0xff] %vm416_vm2, %v387_v41  ;;  %436 = vst.msk [vmem:[%s854_s3 + $0x98] sm:$0xff] %vm416_vm2, %v403_v42  ;;  %v385_v47 = vmax.f32 %v261_v43, 0.0  ;;  %v401_v48 = vmax.f32 %v325_v44, 0.0  ;;  %v282_v49 = vadd.f32 %v528_v45, %v689_v22  ;;  %v346_v50 = vadd.f32 %v544_v46, %v689_v22 }
  0xe0   :  { %v273_v51 = vpop.f32.mrf.mxu0  ;;  %v337_v52 = vpop.f32.mrf.mxu1 }
  0xe1   :  { %418 = vst.msk [vmem:[%s854_s3 + $0x8] sm:$0xff] %vm416_vm2, %v385_v47  ;;  %434 = vst.msk [vmem:[%s854_s3 + $0x88] sm:$0xff] %vm416_vm2, %v401_v48  ;;  %v390_v53 = vmax.f32 %v282_v49, 0.0  ;;  %v406_v54 = vmax.f32 %v346_v50, 0.0  ;;  %v274_v55 = vadd.f32 %v689_v22, %v273_v51  ;;  %v338_v56 = vadd.f32 %v689_v22, %v337_v52 }
  0xe2   :  { %v529_v57 = vpop.f32.mrf.mxu0  ;;  %v545_v58 = vpop.f32.mrf.mxu1 }
  0xe3   :  { %423 = vst.msk [vmem:[%s854_s3 + $0x30] sm:$0xff] %vm416_vm2, %v390_v53  ;;  %439 = vst.msk [vmem:[%s854_s3 + $0xb0] sm:$0xff] %vm416_vm2, %v406_v54  ;;  %v388_v59 = vmax.f32 %v274_v55, 0.0  ;;  %v404_v60 = vmax.f32 %v338_v56, 0.0  ;;  %v285_v61 = vadd.f32 %v529_v57, %v689_v22  ;;  %v349_v62 = vadd.f32 %v545_v58, %v689_v22 }
  0xe4   :  { %v276_v63 = vpop.f32.mrf.mxu0  ;;  %v340_v0 = vpop.f32.mrf.mxu1 }
  0xe5   :  { %421 = vst.msk [vmem:[%s854_s3 + $0x20] sm:$0xff] %vm416_vm2, %v388_v59  ;;  %437 = vst.msk [vmem:[%s854_s3 + $0xa0] sm:$0xff] %vm416_vm2, %v404_v60  ;;  %v391_v1 = vmax.f32 %v285_v61, 0.0  ;;  %v407_v2 = vmax.f32 %v349_v62, 0.0  ;;  %v277_v3 = vadd.f32 %v689_v22, %v276_v63  ;;  %v341_v4 = vadd.f32 %v689_v22, %v340_v0 }
  0xe6   :  { %v532_v5 = vpop.f32.mrf.mxu0  ;;  %v548_v6 = vpop.f32.mrf.mxu1 }
  0xe7   :  { %424 = vst.msk [vmem:[%s854_s3 + $0x38] sm:$0xff] %vm416_vm2, %v391_v1  ;;  %440 = vst.msk [vmem:[%s854_s3 + $0xb8] sm:$0xff] %vm416_vm2, %v407_v2  ;;  %v389_v7 = vmax.f32 %v277_v3, 0.0  ;;  %v405_v8 = vmax.f32 %v341_v4, 0.0  ;;  %v298_v9 = vadd.f32 %v532_v5, %v689_v22  ;;  %v362_v10 = vadd.f32 %v548_v6, %v689_v22 }
  0xe8   :  { %v289_v11 = vpop.f32.mrf.mxu0  ;;  %v353_v12 = vpop.f32.mrf.mxu1 }
  0xe9   :  { %422 = vst.msk [vmem:[%s854_s3 + $0x28] sm:$0xff] %vm416_vm2, %v389_v7  ;;  %438 = vst.msk [vmem:[%s854_s3 + $0xa8] sm:$0xff] %vm416_vm2, %v405_v8  ;;  %v394_v13 = vmax.f32 %v298_v9, 0.0  ;;  %v410_v14 = vmax.f32 %v362_v10, 0.0  ;;  %v290_v15 = vadd.f32 %v689_v22, %v289_v11  ;;  %v354_v16 = vadd.f32 %v689_v22, %v353_v12 }
  0xea   :  { %v533_v17 = vpop.f32.mrf.mxu0  ;;  %v549_v18 = vpop.f32.mrf.mxu1 }
  0xeb   :  { %427 = vst.msk [vmem:[%s854_s3 + $0x50] sm:$0xff] %vm416_vm2, %v394_v13  ;;  %443 = vst.msk [vmem:[%s854_s3 + $0xd0] sm:$0xff] %vm416_vm2, %v410_v14  ;;  %v392_v19 = vmax.f32 %v290_v15, 0.0  ;;  %v408_v20 = vmax.f32 %v354_v16, 0.0  ;;  %v301_v21 = vadd.f32 %v533_v17, %v689_v22  ;;  %v365_v23 = vadd.f32 %v549_v18, %v689_v22 }
  0xec   :  { %v292_v24 = vpop.f32.mrf.mxu0  ;;  %v356_v25 = vpop.f32.mrf.mxu1 }
  0xed   :  { %425 = vst.msk [vmem:[%s854_s3 + $0x40] sm:$0xff] %vm416_vm2, %v392_v19  ;;  %441 = vst.msk [vmem:[%s854_s3 + $0xc0] sm:$0xff] %vm416_vm2, %v408_v20  ;;  %v395_v26 = vmax.f32 %v301_v21, 0.0  ;;  %v411_v27 = vmax.f32 %v365_v23, 0.0  ;;  %v293_v28 = vadd.f32 %v689_v22, %v292_v24  ;;  %v357_v29 = vadd.f32 %v689_v22, %v356_v25 }
  0xee   :  { %v536_v30 = vpop.f32.mrf.mxu0  ;;  %v552_v31 = vpop.f32.mrf.mxu1 }
  0xef   :  { %428 = vst.msk [vmem:[%s854_s3 + $0x58] sm:$0xff] %vm416_vm2, %v395_v26  ;;  %444 = vst.msk [vmem:[%s854_s3 + $0xd8] sm:$0xff] %vm416_vm2, %v411_v27  ;;  %v393_v32 = vmax.f32 %v293_v28, 0.0  ;;  %v409_v33 = vmax.f32 %v357_v29, 0.0  ;;  %v314_v34 = vadd.f32 %v536_v30, %v689_v22  ;;  %v378_v35 = vadd.f32 %v552_v31, %v689_v22 }
  0xf0   :  { %v305_v36 = vpop.f32.mrf.mxu0  ;;  %v369_v37 = vpop.f32.mrf.mxu1 }
  0xf1   :  { %426 = vst.msk [vmem:[%s854_s3 + $0x48] sm:$0xff] %vm416_vm2, %v393_v32  ;;  %442 = vst.msk [vmem:[%s854_s3 + $0xc8] sm:$0xff] %vm416_vm2, %v409_v33  ;;  %v398_v38 = vmax.f32 %v314_v34, 0.0  ;;  %v414_v39 = vmax.f32 %v378_v35, 0.0  ;;  %v306_v40 = vadd.f32 %v689_v22, %v305_v36  ;;  %v370_v41 = vadd.f32 %v689_v22, %v369_v37 }
  0xf2   :  { %v537_v42 = vpop.f32.mrf.mxu0  ;;  %v553_v43 = vpop.f32.mrf.mxu1 }
  0xf3   :  { %431 = vst.msk [vmem:[%s854_s3 + $0x70] sm:$0xff] %vm416_vm2, %v398_v38  ;;  %447 = vst.msk [vmem:[%s854_s3 + $0xf0] sm:$0xff] %vm416_vm2, %v414_v39  ;;  %v396_v44 = vmax.f32 %v306_v40, 0.0  ;;  %v412_v45 = vmax.f32 %v370_v41, 0.0  ;;  %v317_v46 = vadd.f32 %v537_v42, %v689_v22  ;;  %v381_v47 = vadd.f32 %v553_v43, %v689_v22 }
  0xf4   :  { %v308_v48 = vpop.f32.mrf.mxu0  ;;  %v372_v49 = vpop.f32.mrf.mxu1 }
  0xf5   :  { %429 = vst.msk [vmem:[%s854_s3 + $0x60] sm:$0xff] %vm416_vm2, %v396_v44  ;;  %445 = vst.msk [vmem:[%s854_s3 + $0xe0] sm:$0xff] %vm416_vm2, %v412_v45  ;;  %v399_v50 = vmax.f32 %v317_v46, 0.0  ;;  %v415_v51 = vmax.f32 %v381_v47, 0.0  ;;  %v309_v52 = vadd.f32 %v689_v22, %v308_v48  ;;  %v373_v53 = vadd.f32 %v689_v22, %v372_v49 }
  0xf7   :  { %432 = vst.msk [vmem:[%s854_s3 + $0x78] sm:$0xff] %vm416_vm2, %v399_v50  ;;  %448 = vst.msk [vmem:[%s854_s3 + $0xf8] sm:$0xff] %vm416_vm2, %v415_v51  ;;  %v397_v54 = vmax.f32 %v309_v52, 0.0  ;;  %v413_v55 = vmax.f32 %v373_v53, 0.0 }
  0xf9   :  { %430 = vst.msk [vmem:[%s854_s3 + $0x68] sm:$0xff] %vm416_vm2, %v397_v54  ;;  %446 = vst.msk [vmem:[%s854_s3 + $0xe8] sm:$0xff] %vm416_vm2, %v413_v55 }

</bundles_post_ra>
